<compile_context>
chip_gen: v7x
topology: tpu7x:2x2x1
jax: 0.10.0
libtpu: 0.0.40
codegen_flags: <defaults>
</compile_context>

<pallas_src>
import functools

import jax
import jax.numpy as jnp
from jax.experimental import pallas as pl
from jax.experimental.pallas import tpu as pltpu


_VMEM_LIMIT_BYTES = 32 * 1024 * 1024   # explicit scoped-VMEM headroom (safe on v5e/v6e/v7x)
_BN_EPS = 1e-5


# ---------------------------------------------------------------------------
# Kernel 1: 1x1 conv (matmul over channels) + BN statistics of the result
# ---------------------------------------------------------------------------
def pw_conv_stats_kernel(x_ref, w_ref, u_ref, s_ref, ss_ref):
    # x_ref: (C_in, T)  w_ref: (C_out, C_in)  u_ref: (C_out, T)
    # s_ref/ss_ref: (C_out, 1) resident accumulators over the whole grid.
    @pl.when((pl.program_id(0) == 0) & (pl.program_id(1) == 0))
    def _():
        s_ref[...] = jnp.zeros_like(s_ref)
        ss_ref[...] = jnp.zeros_like(ss_ref)

    # NOTE: contraction dims are tiny here; at real channel counts cast the
    # operands to bf16 (MXU native rate) and keep the f32 accumulation.
    u = jnp.dot(w_ref[...], x_ref[...], preferred_element_type=jnp.float32)
    u_ref[...] = u
    s_ref[...] += jnp.sum(u, axis=-1, keepdims=True)
    ss_ref[...] += jnp.sum(u * u, axis=-1, keepdims=True)


# ---------------------------------------------------------------------------
# Kernel 3: BN+SiLU on the depthwise branch, concat folded into a split 1x1 conv,
#           plus BN statistics of the new pre-BN activations.
# ---------------------------------------------------------------------------
def bn_act_pw_conv_stats_kernel(y1_ref, v2_ref, sc_ref, sh_ref, wa_ref, wb_ref,
                                u_ref, s_ref, ss_ref):
    @pl.when((pl.program_id(0) == 0) & (pl.program_id(1) == 0))
    def _():
        s_ref[...] = jnp.zeros_like(s_ref)
        ss_ref[...] = jnp.zeros_like(ss_ref)

    v = v2_ref[...] * sc_ref[...] + sh_ref[...]            # fused BN affine
    y2 = v * (1.0 / (1.0 + jnp.exp(-v)))                   # SiLU
    u = (jnp.dot(wa_ref[...], y1_ref[...], preferred_element_type=jnp.float32)
         + jnp.dot(wb_ref[...], y2, preferred_element_type=jnp.float32))
    u_ref[...] = u
    s_ref[...] += jnp.sum(u, axis=-1, keepdims=True)
    ss_ref[...] += jnp.sum(u * u, axis=-1, keepdims=True)


# ---------------------------------------------------------------------------
# Kernels 2 & 4: BN (+SiLU) fused with the 5x5 depthwise conv (pad=2, stride=1)
#                plus BN statistics of the depthwise output.
# ---------------------------------------------------------------------------
def bn_act_dw_stats_kernel(u_ref, sc_ref, sh_ref, wdw_ref,
                           y_ref, v_ref, s_ref, ss_ref, pad_ref, *, apply_silu):
    C, H, W = u_ref.shape

    @pl.when(pl.program_id(0) == 0)
    def _():
        s_ref[...] = jnp.zeros_like(s_ref)
        ss_ref[...] = jnp.zeros_like(ss_ref)

    y = u_ref[...] * sc_ref[...] + sh_ref[...]             # fused BN affine
    if apply_silu:
        y = y * (1.0 / (1.0 + jnp.exp(-y)))                # SiLU
    y_ref[...] = y

    # Zero-padded copy in VMEM scratch, then 25 shifted FMAs (cross-correlation,
    # same semantics as torch.nn.Conv2d with padding=2, groups=C).
    pad_ref[...] = jnp.zeros(pad_ref.shape, pad_ref.dtype)
    pad_ref[:, pl.ds(2, H), pl.ds(2, W)] = y

    acc = jnp.zeros((C, H, W), jnp.float32)
    for t in range(25):
        dy, dx = t // 5, t % 5
        acc = acc + pad_ref[:, pl.ds(dy, H), pl.ds(dx, W)] * wdw_ref[t]
    v_ref[...] = acc

    row_s = jnp.sum(acc, axis=2, keepdims=True)
    row_ss = jnp.sum(acc * acc, axis=2, keepdims=True)
    s_ref[...] += jnp.sum(row_s, axis=1, keepdims=True)
    ss_ref[...] += jnp.sum(row_ss, axis=1, keepdims=True)


# ---------------------------------------------------------------------------
# Kernel 5: BN on the second ghost half + channel concat + residual add,
#           fused into the output store.
# ---------------------------------------------------------------------------
def bn_concat_residual_kernel(z1_ref, v4_ref, sc_ref, sh_ref, x_ref, o_ref):
    cg = z1_ref.shape[0]
    z2 = v4_ref[...] * sc_ref[...] + sh_ref[...]
    o_ref[pl.ds(0, cg), :] = z1_ref[...] + x_ref[pl.ds(0, cg), :]
    o_ref[pl.ds(cg, cg), :] = z2 + x_ref[pl.ds(cg, cg), :]


# ---------------------------------------------------------------------------
# Host-side glue
# ---------------------------------------------------------------------------
def _bn_affine(s, ss, gamma, beta, count, eps):
    """Training-mode BN folded into a per-channel (scale, shift) affine."""
    s = s.reshape(-1)
    ss = ss.reshape(-1)
    mean = s / count
    # Clamp guards the E[x^2] - E[x]^2 cancellation for large-mean activations.
    var = jnp.maximum(ss / count - mean * mean, 0.0)
    scale = gamma * jax.lax.rsqrt(var + eps)
    shift = beta - mean * scale
    return scale, shift


def _dw_call(u4d, scale, shift, wdw, *, apply_silu):
    """BN(+SiLU) + depthwise 5x5 conv + stats of the conv output."""
    # TODO(synk): for large feature maps, tile H/W here with 2-pixel halos
    # instead of whole-image per-batch blocks.
    B, C, H, W = u4d.shape
    wdw_t = jnp.transpose(wdw, (1, 2, 0)).reshape(25, C, 1, 1)   # [ky*5+kx, c, 1, 1]
    return pl.pallas_call(
        functools.partial(bn_act_dw_stats_kernel, apply_silu=apply_silu),
        out_shape=(jax.ShapeDtypeStruct((B, C, H, W), jnp.float32),
                   jax.ShapeDtypeStruct((B, C, H, W), jnp.float32),
                   jax.ShapeDtypeStruct((C, 1, 1), jnp.float32),
                   jax.ShapeDtypeStruct((C, 1, 1), jnp.float32)),
        grid_spec=pltpu.PrefetchScalarGridSpec(
            num_scalar_prefetch=0,
            grid=(B,),
            in_specs=[pl.BlockSpec((None, C, H, W), lambda b: (b, 0, 0, 0)),
                      pl.BlockSpec((C, 1, 1), lambda b: (0, 0, 0)),
                      pl.BlockSpec((C, 1, 1), lambda b: (0, 0, 0)),
                      pl.BlockSpec((25, C, 1, 1), lambda b: (0, 0, 0, 0))],
            out_specs=(pl.BlockSpec((None, C, H, W), lambda b: (b, 0, 0, 0)),
                       pl.BlockSpec((None, C, H, W), lambda b: (b, 0, 0, 0)),
                       pl.BlockSpec((C, 1, 1), lambda b: (0, 0, 0)),
                       pl.BlockSpec((C, 1, 1), lambda b: (0, 0, 0))),
            scratch_shapes=[pltpu.VMEM((C, H + 4, W + 4), jnp.float32)]),
        compiler_params=pltpu.CompilerParams(
            dimension_semantics=("arbitrary",),
            vmem_limit_bytes=_VMEM_LIMIT_BYTES),
    )(u4d, scale.reshape(C, 1, 1), shift.reshape(C, 1, 1), wdw_t)


def ghost_bottleneck(x, p, eps=_BN_EPS):
    """GhostBottleneck forward with the module defaults (k=3, s=1)."""
    # TODO(synk): s == 2 path (strided 3x3 DWConv mid-block and DWConv + 1x1 Conv
    # shortcut) not implemented; with the default s == 1 both reduce to Identity.
    B, C1, H, W = x.shape
    HW = H * W
    w1 = p['w1'].astype(jnp.float32)
    w3 = p['w3'].astype(jnp.float32)
    Cg1 = w1.shape[0]            # GhostConv1.cv1 output channels  (c2 // 4)
    Cg2 = w3.shape[0]            # GhostConv2.cv1 output channels  (c2 // 2)
    C2 = 2 * Cg2
    assert C1 == C2, "s=1 GhostBottleneck needs c1 == c2 for the residual add"
    assert HW % 128 == 0, "pad H*W to a multiple of 128 for lane-dense tiles"

    # Lane-dense HW tile (multiple of 128); keeps the per-step working set far
    # below VMEM on every generation (64 MiB on v7x) even at real feature-map sizes.
    t_hw = next(t for t in (2048, 1024, 512, 256, 128) if HW % t == 0)
    n_hw = HW // t_hw
    count = jnp.float32(B * HW)

    x = x.astype(jnp.float32)
    x_flat = x.reshape(B, C1, HW)

    mm_params = pltpu.CompilerParams(
        dimension_semantics=("arbitrary", "arbitrary"),   # resident stats accumulators
        vmem_limit_bytes=_VMEM_LIMIT_BYTES)

    # --- GhostConv1.cv1: 1x1 conv + BN1 statistics ---------------------------
    u1, s1, ss1 = pl.pallas_call(
        pw_conv_stats_kernel,
        out_shape=(jax.ShapeDtypeStruct((B, Cg1, HW), jnp.float32),
                   jax.ShapeDtypeStruct((Cg1, 1), jnp.float32),
                   jax.ShapeDtypeStruct((Cg1, 1), jnp.float32)),
        grid_spec=pltpu.PrefetchScalarGridSpec(
            num_scalar_prefetch=0,
            grid=(B, n_hw),
            in_specs=[pl.BlockSpec((None, C1, t_hw), lambda b, h: (b, 0, h)),
                      pl.BlockSpec((Cg1, C1), lambda b, h: (0, 0))],
            out_specs=(pl.BlockSpec((None, Cg1, t_hw), lambda b, h: (b, 0, h)),
                       pl.BlockSpec((Cg1, 1), lambda b, h: (0, 0)),
                       pl.BlockSpec((Cg1, 1), lambda b, h: (0, 0)))),
        compiler_params=mm_params,
    )(x_flat, w1)
    scale1, shift1 = _bn_affine(s1, ss1, p['bn1_g'], p['bn1_b'], count, eps)

    # --- GhostConv1.cv2: BN1+SiLU fused with 5x5 depthwise conv + BN2 stats ---
    y1, v2, s2, ss2 = _dw_call(u1.reshape(B, Cg1, H, W), scale1, shift1,
                               p['wdw1'].astype(jnp.float32), apply_silu=True)
    scale2, shift2 = _bn_affine(s2, ss2, p['bn2_g'], p['bn2_b'], count, eps)

    # --- GhostConv2.cv1: BN2+SiLU fused with 1x1 conv on concat([y1, y2]) -----
    w3a, w3b = w3[:, :Cg1], w3[:, Cg1:]
    u3, s3, ss3 = pl.pallas_call(
        bn_act_pw_conv_stats_kernel,
        out_shape=(jax.ShapeDtypeStruct((B, Cg2, HW), jnp.float32),
                   jax.ShapeDtypeStruct((Cg2, 1), jnp.float32),
                   jax.ShapeDtypeStruct((Cg2, 1), jnp.float32)),
        grid_spec=pltpu.PrefetchScalarGridSpec(
            num_scalar_prefetch=0,
            grid=(B, n_hw),
            in_specs=[pl.BlockSpec((None, Cg1, t_hw), lambda b, h: (b, 0, h)),
                      pl.BlockSpec((None, Cg1, t_hw), lambda b, h: (b, 0, h)),
                      pl.BlockSpec((Cg1, 1), lambda b, h: (0, 0)),
                      pl.BlockSpec((Cg1, 1), lambda b, h: (0, 0)),
                      pl.BlockSpec((Cg2, Cg1), lambda b, h: (0, 0)),
                      pl.BlockSpec((Cg2, Cg1), lambda b, h: (0, 0))],
            out_specs=(pl.BlockSpec((None, Cg2, t_hw), lambda b, h: (b, 0, h)),
                       pl.BlockSpec((Cg2, 1), lambda b, h: (0, 0)),
                       pl.BlockSpec((Cg2, 1), lambda b, h: (0, 0)))),
        compiler_params=mm_params,
    )(y1.reshape(B, Cg1, HW), v2.reshape(B, Cg1, HW),
      scale2.reshape(Cg1, 1), shift2.reshape(Cg1, 1), w3a, w3b)
    scale3, shift3 = _bn_affine(s3, ss3, p['bn3_g'], p['bn3_b'], count, eps)

    # --- GhostConv2.cv2: BN3 fused with 5x5 depthwise conv + BN4 stats --------
    z1, v4, s4, ss4 = _dw_call(u3.reshape(B, Cg2, H, W), scale3, shift3,
                               p['wdw2'].astype(jnp.float32), apply_silu=False)
    scale4, shift4 = _bn_affine(s4, ss4, p['bn4_g'], p['bn4_b'], count, eps)

    # --- BN4 + channel concat + residual add, fused into the output store -----
    out = pl.pallas_call(
        bn_concat_residual_kernel,
        out_shape=jax.ShapeDtypeStruct((B, C2, HW), jnp.float32),
        grid_spec=pltpu.PrefetchScalarGridSpec(
            num_scalar_prefetch=0,
            grid=(B, n_hw),
            in_specs=[pl.BlockSpec((None, Cg2, t_hw), lambda b, h: (b, 0, h)),
                      pl.BlockSpec((None, Cg2, t_hw), lambda b, h: (b, 0, h)),
                      pl.BlockSpec((Cg2, 1), lambda b, h: (0, 0)),
                      pl.BlockSpec((Cg2, 1), lambda b, h: (0, 0)),
                      pl.BlockSpec((None, C1, t_hw), lambda b, h: (b, 0, h))],
            out_specs=pl.BlockSpec((None, C2, t_hw), lambda b, h: (b, 0, h))),
        compiler_params=pltpu.CompilerParams(
            dimension_semantics=("parallel", "parallel"),
            vmem_limit_bytes=_VMEM_LIMIT_BYTES),
    )(z1.reshape(B, Cg2, HW), v4.reshape(B, Cg2, HW),
      scale4.reshape(Cg2, 1), shift4.reshape(Cg2, 1), x_flat)

    return out.reshape(B, C2, H, W)


# ---------------------------------------------------------------------------
# Pure-JAX reference (for in-script sanity check)
# ---------------------------------------------------------------------------
def reference(x, p, eps=_BN_EPS):
    hp = jax.lax.Precision.HIGHEST

    def bn(u, g, b):
        mean = jnp.mean(u, axis=(0, 2, 3), keepdims=True)
        var = jnp.mean((u - mean) ** 2, axis=(0, 2, 3), keepdims=True)
        return ((u - mean) * jax.lax.rsqrt(var + eps) * g.reshape(1, -1, 1, 1)
                + b.reshape(1, -1, 1, 1))

    def silu(t):
        return t * jax.nn.sigmoid(t)

    def pw(u, w):
        return jnp.einsum('oc,bchw->bohw', w, u, precision=hp)

    def dw(u, w):
        c = u.shape[1]
        return jax.lax.conv_general_dilated(
            u, w.reshape(c, 1, 5, 5), (1, 1), ((2, 2), (2, 2)),
            dimension_numbers=('NCHW', 'OIHW', 'NCHW'),
            feature_group_count=c, precision=hp)

    # GhostConv(c1, c2//2) with SiLU
    y1 = silu(bn(pw(x, p['w1']), p['bn1_g'], p['bn1_b']))
    y2 = silu(bn(dw(y1, p['wdw1']), p['bn2_g'], p['bn2_b']))
    g1 = jnp.concatenate([y1, y2], axis=1)
    # GhostConv(c2//2, c2) with act=False
    z1 = bn(pw(g1, p['w3']), p['bn3_g'], p['bn3_b'])
    z2 = bn(dw(z1, p['wdw2']), p['bn4_g'], p['bn4_b'])
    return jnp.concatenate([z1, z2], axis=1) + x


if __name__ == "__main__":
    key = jax.random.PRNGKey(0)
    ks = jax.random.split(key, 13)

    # GhostBottleneck(c1=16, c2=16, k=3, s=1) on a (2, 16, 16, 16) input.
    B, C1, H, W = 2, 16, 16, 16
    C2 = C1
    c_hidden = C2 // 2            # GhostConv1 output channels
    Cg1 = c_hidden // 2           # GhostConv1.cv1 output channels
    Cg2 = C2 // 2                 # GhostConv2.cv1 output channels

    x = jax.random.normal(ks[0], (B, C1, H, W), dtype=jnp.float32)

    def conv_weight(k, co, ci, kh, kw):
        fan_in = ci * kh * kw
        return (jax.random.normal(k, (co, ci, kh, kw), dtype=jnp.float32)
                / jnp.sqrt(jnp.float32(fan_in)))

    p = {
        'w1': conv_weight(ks[1], Cg1, C1, 1, 1).reshape(Cg1, C1),
        'wdw1': conv_weight(ks[2], Cg1, 1, 5, 5).reshape(Cg1, 5, 5),
        'w3': conv_weight(ks[3], Cg2, 2 * Cg1, 1, 1).reshape(Cg2, 2 * Cg1),
        'wdw2': conv_weight(ks[4], Cg2, 1, 5, 5).reshape(Cg2, 5, 5),
        'bn1_g': 1.0 + 0.1 * jax.random.normal(ks[5], (Cg1,), dtype=jnp.float32),
        'bn1_b': 0.1 * jax.random.normal(ks[6], (Cg1,), dtype=jnp.float32),
        'bn2_g': 1.0 + 0.1 * jax.random.normal(ks[7], (Cg1,), dtype=jnp.float32),
        'bn2_b': 0.1 * jax.random.normal(ks[8], (Cg1,), dtype=jnp.float32),
        'bn3_g': 1.0 + 0.1 * jax.random.normal(ks[9], (Cg2,), dtype=jnp.float32),
        'bn3_b': 0.1 * jax.random.normal(ks[10], (Cg2,), dtype=jnp.float32),
        'bn4_g': 1.0 + 0.1 * jax.random.normal(ks[11], (Cg2,), dtype=jnp.float32),
        'bn4_b': 0.1 * jax.random.normal(ks[12], (Cg2,), dtype=jnp.float32),
    }

    out = ghost_bottleneck(x, p)
    out = jax.block_until_ready(out)

    ref = reference(x, p)
    assert out.shape == (B, C2, H, W)
    max_err = float(jnp.max(jnp.abs(out - ref)))
    assert jnp.allclose(out, ref, atol=1e-3, rtol=1e-3), max_err

    print("KERNEL_OK")
</pallas_src>

<mosaic_0001>
module attributes {stable_mosaic.version = 11 : i64} {
  func.func @pw_conv_stats_kernel(%arg0: i32, %arg1: i32, %arg2: memref<1x16x256xf32, #tpu.memory_space<vmem>>, %arg3: memref<4x16xf32, #tpu.memory_space<vmem>>, %arg4: memref<1x4x256xf32, #tpu.memory_space<vmem>>, %arg5: memref<4x1xf32, #tpu.memory_space<vmem>>, %arg6: memref<4x1xf32, #tpu.memory_space<vmem>>) attributes {dimension_semantics = [#tpu.dimension_semantics<arbitrary>, #tpu.dimension_semantics<arbitrary>], iteration_bounds = array<i64: 2, 1>, scalar_prefetch = 0 : i64, scratch_operands = 0 : i64, tpu.core_type = #tpu.core_type<tc>, window_params = [{transform_indices = @transform_0, window_bounds = array<i64: 1, 16, 256>}, {pipeline_mode = #tpu.pipeline_mode<synchronous>, transform_indices = @transform_1, window_bounds = array<i64: 4, 16>}, {transform_indices = @transform_2, window_bounds = array<i64: 1, 4, 256>}, {pipeline_mode = #tpu.pipeline_mode<synchronous>, transform_indices = @transform_3, window_bounds = array<i64: 4, 1>}, {pipeline_mode = #tpu.pipeline_mode<synchronous>, transform_indices = @transform_4, window_bounds = array<i64: 4, 1>}]} {
    %c0_i32 = arith.constant 0 : i32
    %0 = arith.cmpi eq, %arg0, %c0_i32 : i32
    %c0_i32_0 = arith.constant 0 : i32
    %1 = arith.cmpi eq, %arg1, %c0_i32_0 : i32
    %2 = arith.andi %0, %1 : i1
    %3 = arith.extui %2 : i1 to i32
    %c0_i32_1 = arith.constant 0 : i32
    %4 = arith.cmpi ne, %3, %c0_i32_1 : i32
    scf.if %4 {
      %cst_19 = arith.constant 0.000000e+00 : f32
      %23 = vector.broadcast %cst_19 : f32 to vector<4x1xf32>
      %c0_20 = arith.constant 0 : index
      %c0_21 = arith.constant 0 : index
      %24 = vector.load %arg5[%c0_20, %c0_21] : memref<4x1xf32, #tpu.memory_space<vmem>>, vector<4x1xf32>
      tpu.vector_store %arg5[%c0_20, %c0_21], %23 {strides = array<i32>} : memref<4x1xf32, #tpu.memory_space<vmem>>, vector<4x1xf32>,
      %cst_22 = arith.constant 0.000000e+00 : f32
      %25 = vector.broadcast %cst_22 : f32 to vector<4x1xf32>
      %c0_23 = arith.constant 0 : index
      %c0_24 = arith.constant 0 : index
      %26 = vector.load %arg6[%c0_23, %c0_24] : memref<4x1xf32, #tpu.memory_space<vmem>>, vector<4x1xf32>
      tpu.vector_store %arg6[%c0_23, %c0_24], %25 {strides = array<i32>} : memref<4x1xf32, #tpu.memory_space<vmem>>, vector<4x1xf32>,
    } else {
    }
    %c0 = arith.constant 0 : index
    %c0_2 = arith.constant 0 : index
    %5 = vector.load %arg3[%c0, %c0_2] : memref<4x16xf32, #tpu.memory_space<vmem>>, vector<4x16xf32>
    %c0_3 = arith.constant 0 : index
    %c0_4 = arith.constant 0 : index
    %c0_5 = arith.constant 0 : index
    %6 = vector.load %arg2[%c0_3, %c0_4, %c0_5] : memref<1x16x256xf32, #tpu.memory_space<vmem>>, vector<1x16x256xf32>
    %7 = vector.shape_cast %6 : vector<1x16x256xf32> to vector<16x256xf32>
    %cst = arith.constant dense<0.000000e+00> : vector<4x256xf32>
    %8 = tpu.matmul %5, %7, %cst {dimension_numbers = #tpu.dot_dimension_numbers<[1], [0], [0], [1], [0, 0, 1, 1], [], []>} : vector<4x16xf32>, vector<16x256xf32>, vector<4x256xf32> -> vector<4x256xf32>
    %c0_6 = arith.constant 0 : index
    %c0_7 = arith.constant 0 : index
    %c0_8 = arith.constant 0 : index
    %9 = vector.load %arg4[%c0_6, %c0_7, %c0_8] : memref<1x4x256xf32, #tpu.memory_space<vmem>>, vector<1x4x256xf32>
    %10 = vector.shape_cast %9 : vector<1x4x256xf32> to vector<4x256xf32>
    %11 = vector.shape_cast %8 : vector<4x256xf32> to vector<1x4x256xf32>
    tpu.vector_store %arg4[%c0_6, %c0_7, %c0_8], %11 {strides = array<i32>} : memref<1x4x256xf32, #tpu.memory_space<vmem>>, vector<1x4x256xf32>,
    %c0_9 = arith.constant 0 : index
    %c0_10 = arith.constant 0 : index
    %12 = vector.load %arg5[%c0_9, %c0_10] : memref<4x1xf32, #tpu.memory_space<vmem>>, vector<4x1xf32>
    %cst_11 = arith.constant dense<0.000000e+00> : vector<4xf32>
    %13 = vector.multi_reduction <add>, %8, %cst_11 [1] : vector<4x256xf32> to vector<4xf32>
    %14 = vector.shape_cast %13 : vector<4xf32> to vector<4x1xf32>
    %15 = arith.addf %12, %14 : vector<4x1xf32>
    %c0_12 = arith.constant 0 : index
    %c0_13 = arith.constant 0 : index
    %16 = vector.load %arg5[%c0_12, %c0_13] : memref<4x1xf32, #tpu.memory_space<vmem>>, vector<4x1xf32>
    tpu.vector_store %arg5[%c0_12, %c0_13], %15 {strides = array<i32>} : memref<4x1xf32, #tpu.memory_space<vmem>>, vector<4x1xf32>,
    %c0_14 = arith.constant 0 : index
    %c0_15 = arith.constant 0 : index
    %17 = vector.load %arg6[%c0_14, %c0_15] : memref<4x1xf32, #tpu.memory_space<vmem>>, vector<4x1xf32>
    %18 = arith.mulf %8, %8 : vector<4x256xf32>
    %cst_16 = arith.constant dense<0.000000e+00> : vector<4xf32>
    %19 = vector.multi_reduction <add>, %18, %cst_16 [1] : vector<4x256xf32> to vector<4xf32>
    %20 = vector.shape_cast %19 : vector<4xf32> to vector<4x1xf32>
    %21 = arith.addf %17, %20 : vector<4x1xf32>
    %c0_17 = arith.constant 0 : index
    %c0_18 = arith.constant 0 : index
    %22 = vector.load %arg6[%c0_17, %c0_18] : memref<4x1xf32, #tpu.memory_space<vmem>>, vector<4x1xf32>
    tpu.vector_store %arg6[%c0_17, %c0_18], %21 {strides = array<i32>} : memref<4x1xf32, #tpu.memory_space<vmem>>, vector<4x1xf32>,
    return
  }
  func.func @transform_0(%arg0: i32, %arg1: i32) -> (i32, i32, i32) {
    %c0_i32 = arith.constant 0 : i32
    %c0_i32_0 = arith.constant 0 : i32
    return %arg0, %c0_i32, %arg1 : i32, i32, i32
  }
  func.func @transform_1(%arg0: i32, %arg1: i32) -> (i32, i32) {
    %c0_i32 = arith.constant 0 : i32
    %c0_i32_0 = arith.constant 0 : i32
    %c0_i32_1 = arith.constant 0 : i32
    return %c0_i32, %c0_i32_0 : i32, i32
  }
  func.func @transform_2(%arg0: i32, %arg1: i32) -> (i32, i32, i32) {
    %c0_i32 = arith.constant 0 : i32
    %c0_i32_0 = arith.constant 0 : i32
    return %arg0, %c0_i32, %arg1 : i32, i32, i32
  }
  func.func @transform_3(%arg0: i32, %arg1: i32) -> (i32, i32) {
    %c0_i32 = arith.constant 0 : i32
    %c0_i32_0 = arith.constant 0 : i32
    %c0_i32_1 = arith.constant 0 : i32
    return %c0_i32, %c0_i32_0 : i32, i32
  }
  func.func @transform_4(%arg0: i32, %arg1: i32) -> (i32, i32) {
    %c0_i32 = arith.constant 0 : i32
    %c0_i32_0 = arith.constant 0 : i32
    %c0_i32_1 = arith.constant 0 : i32
    return %c0_i32, %c0_i32_0 : i32, i32
  }
}

</mosaic_0001>

<bundles_post_ra>
// kernel: tpu_custom_call.1
= control target key start
LH: loop header
LB: loop body
LE: loop exit
PB: predicated region body
PF: predicated region fallthrough
CT: control target
= control target key end

     0   :  { %10 = vsyncpa [#allocation3], 0  ;;  %s999_s0 = inlined_call_operand.hbm [shape: f32[2,16,256], index: 0, kind: input, shape index: {}]   ;;  %s1000_s1 = inlined_call_operand.hbm [shape: f32[4,16], index: 1, kind: input, shape index: {}]   ;;  %s1001_s2 = inlined_call_operand.hbm [shape: f32[2,4,256], index: 2, kind: output, shape index: {0}]   ;;  %s1002_s3 = inlined_call_operand.vmem [shape: f32[4,1], index: 3, kind: output, shape index: {1}]   ;;  %s1003_s4 = inlined_call_operand.vmem [shape: f32[4,1], index: 4, kind: output, shape index: {2}]  }
   0x1   :  { %12 = vsyncpa [#allocation3 + $0x1], 0 }
   0x2   :  { %13 = vsyncpa [#allocation6], 0 }
   0x3   :  { %14 = vsyncpa [#allocation4], 0 }
   0x4   :  { %16 = vsyncpa [#allocation4 + $0x1], 0  ;;  %s762_s15 = smov 0   ;;  %s764_s16 = smov 0  }
   0x5   :  { %s766_s17 = smov 0   ;;  %s768_s18 = smov 0  }
   0x6   :  { %s770_s19 = smov 0   ;;  %s772_s20 = smov 0  }
   0x7 LB: > { %s481_s21 = sadd.s32 4294967295, %s728_s20   ;;  %s482_s22 = sadd.s32 4294967294, %s728_s20   ;;  %s728_s20 = sphi %s772_s20, %s22_s20   ;;  %s724_s19 = sphi %s770_s19, %s1031_s19   ;;  %s720_s18 = sphi %s768_s18, %s1030_s18   ;;  %s716_s17 = sphi %s766_s17, %s1029_s17   ;;  %s712_s16 = sphi %s764_s16, %s1028_s16   ;;  %s708_s15 = sphi %s762_s15, %s1027_s15  }
   0x8   : > { %s43_s23 = sadd.s32 1, %s716_s17  ;;  %p50_p0 = scmp.ne.s32.totalorder %s716_s17, %s712_s16 }
   0x9   : > { %p51_p1 = scmp.eq.s32.totalorder %s728_s20, 0  ;;  %p56_p2 = scmp.ne.s32.totalorder %s712_s16, %s708_s15 }
   0xa   : > { %p800_p3 = scmp.eq.s32.totalorder %s481_s21, 0  ;;  %p103_p4 = scmp.eq.s32.totalorder %s481_s21, 1 }
   0xb   : > { %p804_p5 = por %p51_p1, %p50_p0  ;;  %p109_p6 = scmp.eq.s32.totalorder %s482_s22, 1 }
   0xc   : > { %s1010_s24 = scalar_select %p800_p3, 1, 0 }
   0xd   : > { %p810_p7 = por %p800_p3, %p56_p2  ;;  %p814_p8 = por %p103_p4, %p50_p0 }
   0xe   : > { %p818_p9 = por %p109_p6, %p56_p2  ;;  %p483_p10 = scmp.ge.s32.totalorder %s728_s20, 1 }
   0xf   : > { %s1012_s26 = scalar_select %p810_p7, 1, 0 }
  0x10   : > { %s1013_s27 = scalar_select %p814_p8, 1, 0 }
  0x11   : > { %s1014_s28 = scalar_select %p818_p9, 1, 0 }
  0x12   : > { %p158_p11 = scmp.lt.s32.totalorder %s728_s20, 3  ;;  %s730_s30 = smov [#allocation5]  }
  0x13   : > { %s171_s5 = sshll.u32 %s730_s30, 4  ;;  %p528_p1 = scmp.lt.s32.totalorder %s728_s20, 2  ;;  %s172_s5 = int_to_ptr.vmem [resolvable:$true] %s171_s5 }
  0x14   : > { %p825_p13 = pnand %p483_p10, %p158_p11  ;;  %s34_s8 = sadd.s32 1, %s724_s19 }
  0x15   : > { %p834_p4 = pnand %p528_p1, %p804_p5  ;;  %p845_p6 = scmp.ge.s32.totalorder %s34_s8, 2 }
  0x16   : > { %s1015_s29 = scalar_select %p825_p13, 1, 0 }
  0x17   : > { %p515_p0 = pneg %p825_p13  ;;  %s182_s10 = sand.u32 1, %s716_s17  }
  0x18   : > { %s1016_s6 = scalar_select %p834_p4, 1, 0 }
  0x19   : > { %p840_p2 = pnand %p515_p0, %p800_p3  ;;  %s584_s13 = scalar_lea.hbm %s1000_s1, 64 }
  0x1a   : > { %s1018_s9 = scalar_select %p845_p6, 1, 0 }
  0x1b   : > { %p585_p5 = scmp.ne.s32.totalorder %s1000_s1, %s584_s13  ;;  %p586_p10 = pneg %p840_p2 }
  0x1c   : > { %p591_p0 = scmp.lt.u32.totalorder %s584_s13, %s1000_s1 }
  0x1d   : > { %p587_p11 = pnand %p586_p10, %p585_p5 }
  0x1f   : > { %p588_p1 = pneg %p587_p11 }
  0x21   : > { %p593_p12 = pnand %p591_p0, %p588_p1 }
  0x23   : > { %596 = shalt.err (!%p593_p12)
}
  0x24   : > { %s597_s30 = scalar_lea.vmem %s172_s5, 64  ;;  %p605_p7 = scmp.lt.s32.totalorder %s172_s5, %s172_s5 }
  0x25   : > { %p598_p9 = scmp.ne.s32.totalorder %s172_s5, %s597_s30  ;;  %p606_p13 = scmp.lt.s32.totalorder %s597_s30, %s597_s30 }
  0x27   : > { %p600_p8 = pnand %p598_p9, %p586_p10  ;;  %p607_p4 = por %p606_p13, %p605_p7 }
  0x29   : > { %p601_p3 = pneg %p600_p8 }
  0x2b   : > { %p608_p6 = pnand %p607_p4, %p601_p3 }
  0x2d   : > { %611 = shalt.err (!%p608_p6)
}
  0x2e   : > { %518 = dma.hbm_to_vmem [thread:$0]  (!%p840_p2), %s1000_s1, 64, %s172_s5, [#allocation6]  }
  0x2f   : > { %p1019_p9 = scmp.ne.s32.totalorder %s1018_s9, 0  ;;  %s486_s13 = sshll.u32 %s182_s10, 5 }
  0x30   : > { %s500_s21 = sshll.u32 %s724_s19, 9  ;;  %s186_s30 = scalar_lea.vmem [#allocation2], %s486_s13 }
  0x31   : > { %s1033_s8 = smov (%p1019_p9, %s34_s8), 0  ;;  %s876_s25 = scalar_lea.hbm %s999_s0, %s500_s21 }
  0x32   : > { %s38_s14 = ssub.s32 %s724_s19, %s1033_s8  ;;  %s195_s11 = sshll.u32 %s186_s30, 4  ;;  %s883_s11 = int_to_ptr.vmem [resolvable:$true] %s195_s11 }
  0x33   : > { %p41_p3 = scmp.eq.s32.totalorder %s38_s14, 0  ;;  %s885_s9 = scalar_lea.sflag [#allocation3], %s182_s10 }
  0x34   : > { %s612_s12 = scalar_lea.hbm %s876_s25, 512  ;;  %p1020_p8 = scmp.ne.s32.totalorder %s1016_s6, 0 }
  0x35   : > { %s881_s5 = scalar_select %p41_p3, %s716_s17, %s43_s23  }
  0x36   : > { %p613_p7 = scmp.ne.s32.totalorder %s876_s25, %s612_s12  ;;  %p614_p12 = pneg %p1020_p8 }
  0x37   : > { %s617_s13 = scalar_lea.hbm %s999_s0, 1024  ;;  %p618_p2 = scmp.lt.u32.totalorder %s876_s25, %s999_s0 }
  0x38   : > { %p615_p13 = pnand %p614_p12, %p613_p7  ;;  %p619_p6 = scmp.lt.u32.totalorder %s617_s13, %s612_s12 }
  0x39   : > { %p621_p10 = scmp.lt.u32.totalorder %s612_s12, %s876_s25 }
  0x3a   : > { %p616_p4 = pneg %p615_p13  ;;  %p620_p5 = por %p619_p6, %p618_p2 }
  0x3c   : > { %p622_p11 = por %p621_p10, %p620_p5 }
  0x3e   : > { %p623_p1 = pnand %p622_p11, %p616_p4 }
  0x40   : > { %626 = shalt.err (!%p623_p1)
}
  0x41   : > { %s627_s23 = scalar_lea.vmem %s883_s11, 512  ;;  %s731_s10 = smov [#allocation2]  }
  0x42   : > { %p628_p0 = scmp.ne.s32.totalorder %s883_s11, %s627_s23  ;;  %s632_s30 = sshll.u32 %s731_s10, 4  ;;  %s633_s30 = int_to_ptr.vmem [resolvable:$false] %s632_s30 }
  0x43   : > { %s634_s14 = scalar_lea.vmem %s633_s30, 1024  ;;  %p635_p7 = scmp.lt.s32.totalorder %s883_s11, %s633_s30 }
  0x44   : > { %p630_p9 = pnand %p628_p0, %p614_p12  ;;  %p636_p13 = scmp.lt.s32.totalorder %s634_s14, %s627_s23 }
  0x46   : > { %p631_p3 = pneg %p630_p9  ;;  %p637_p2 = por %p636_p13, %p635_p7 }
  0x48   : > { %p638_p6 = pnand %p637_p2, %p631_p3 }
  0x4a   : > { %641 = shalt.err (!%p638_p6)
}
  0x4b   : > { %s732_s12 = smov 256   ;;  %s733_s21 = smov 16  }
  0x4c   : > { %522 = dma.hbm_to_vmem [thread:$0]  (!%p1020_p8), %s876_s25, 512, %s883_s11, %s885_s9, %s732_s12, %s732_s12, %s733_s21  }
  0x4d   : > { %p1021_p12 = scmp.ne.s32.totalorder %s1015_s29, 0 }
  0x4e   : > { %s916_s13 = sand.u32 (!%p1021_p12), 1, %s712_s16   ;;  %p1022_p4 = scmp.ne.s32.totalorder (!%p1021_p12), %s1012_s26, 0 }
  0x4f   : > { %207 = sbr.rel (%p1021_p12) target bundleno = 471 (0x1d7), region = 28  ;;  %s490_s7 = sshll.u32 (!%p1021_p12), %s916_s13, 5 }
  0x50   : > { %s210_s22 = scalar_lea.sflag (!%p1021_p12), [#allocation3], %s916_s13  ;;  %s213_s23 = scalar_lea.vmem (!%p1021_p12), [#allocation2], %s490_s7 }
  0x56   : > { %695 = dma.done.wait (%p1022_p4), %s210_s22, 512  }
  0x57   : > { %697 = vsyncadd (%p1022_p4), %s210_s22, 4294966784  ;;  %p1023_p5 = scmp.ne.s32.totalorder %s1010_s24, 0 }
  0x59   : > { %699 = dma.done.wait (%p1023_p5), [#allocation6], 64  }
  0x5a   : > { %701 = vsyncadd (%p1023_p5), [#allocation6], 4294967232  ;;  %s492_s29 = sshll.u32 %s916_s13, 3  ;;  %p244_p8 = scmp.eq.s32.totalorder %s720_s18, 0 }
  0x5b   : > { %s930_s6 = scalar_lea.vmem [#allocation7], %s492_s29  ;;  %vm250_vm0 = vcmask (%p244_p8), 3072   ;;  %v734_v0 = vmov (%p244_p8), 0.0  }
  0x5c   : > { %249 = sbr.rel (!%p244_p8) target bundleno = 99 (0x63), region = 40  ;;  %251 = vst.msk [vmem:[%s1002_s3] sm:$0xf] (%p244_p8), %vm250_vm0, %v734_v0  ;;  %252 = vst.msk [vmem:[%s1003_s4] sm:$0xf] (%p244_p8), %vm250_vm0, %v734_v0 }
  0x63 PF: > { %v255_v1 = vld [vmem:[%s213_s23 + $0x8] sm:$0xff]  ;;  %v257_v2 = vld [vmem:[%s213_s23 + $0x18] sm:$0xff]  ;;  %v254_v3 = vld [vmem:[%s213_s23] sm:$0xff]  ;;  %v735_v6 = vmov 0.0   ;;  %vm258_vm1 = vcmask 130048   ;;  %vm339_vm2 = vcmask 1043456  }
  0x64   : > { %v503_v4 = vpack.c.bf16 %v257_v2, %v255_v1  ;;  %v256_v5 = vld [vmem:[%s213_s23 + $0x10] sm:$0xff]  ;;  %326 = vmatprep.mubr.f32.mxu0 %v735_v6  ;;  %v253_v8 = vld [vmem:[#allocation5] sm:$0xf]  ;;  %s502_s24 = sshll.u32 %s720_s18, 7  ;;  %s375_s10 = sshll.u32 %s930_s6, 4  ;;  %s376_s10 = int_to_ptr.vmem [resolvable:$true] %s375_s10 }
  0x65   : > { %v505_v7 = vpack.c.bf16 %v256_v5, %v254_v3  ;;  %s944_s12 = scalar_lea.hbm %s1001_s2, %s502_s24  ;;  %s359_s21 = scalar_lea.sflag [#allocation4], %s916_s13 }
  0x66   : > { %504 = vmatprep.subr.bf16.mxu0 %v503_v4  ;;  %s642_s7 = scalar_lea.vmem %s376_s10, 128  ;;  %p1024_p11 = scmp.ne.s32.totalorder %s1013_s27, 0 }
  0x67   : > { %506 = vmatpush1.bf16.msra.mxu0 %v505_v7  ;;  %p643_p10 = scmp.ne.s32.totalorder %s376_s10, %s642_s7  ;;  %s736_s22 = smov [#allocation7]  }
  0x68   : > { %s646_s23 = sshll.u32 %s736_s22, 4  ;;  %s647_s23 = int_to_ptr.vmem [resolvable:$false] %s646_s23 }
  0x69   : > { %p644_p1 = pnand %p643_p10, %p1024_p11  ;;  %s648_s29 = scalar_lea.vmem %s647_s23, 256 }
  0x6a   : > { %494 = vmatmul.mubr.msk.f32.vlgmr.msra.gmra.mrb[0].mxu0 %vm258_vm1, %v253_v8  ;;  %p649_p9 = scmp.lt.s32.totalorder %s376_s10, %s647_s23  ;;  %p650_p3 = scmp.lt.s32.totalorder %s648_s29, %s642_s7 }
  0x6b   : > { %p645_p0 = pneg %p644_p1 }
  0x6c   : > { %p651_p7 = por %p650_p3, %p649_p9 }
  0x6e   : > { %p652_p13 = pnand %p651_p7, %p645_p0 }
 0x13d   : > { %v328_v9 = vpop.f32.mrb[0].mxu0 }
 0x13e   : > { %v349_v10 = vmul.f32 %v328_v9, %v328_v9  ;;  %v330_v11 = vpop.f32.mrb[1].mxu0  ;;  %v340_v12 = vsel %vm339_vm2, %v328_v9, 0.0 }
 0x13f   : > { %v335_v13 = vcombine.low %v328_v9, %v330_v11  ;;  %v350_v14 = vmul.f32 %v330_v11, %v330_v11  ;;  %v341_v15 = vsel %vm339_vm2, %v330_v11, 0.0 }
 0x140   : > { %v342_v16 = vadd.f32 %v341_v15, %v340_v12  ;;  %v351_v17 = vsel %vm339_vm2, %v349_v10, 0.0 }
 0x141   : > { %337 = vst [vmem:[%s930_s6] sm:$0xff] %v335_v13  ;;  %v352_v18 = vsel %vm339_vm2, %v350_v14, 0.0 }
 0x142   : > { %343 = vadd.xlane.f32.xlu0 %v342_v16  ;;  %v353_v19 = vadd.f32 %v352_v18, %v351_v17 }
 0x146   : > { %354 = vadd.xlane.f32.xlu0 %v353_v19 }
 0x147   : > { %655 = shalt.err (!%p652_p13)
}
 0x148   : > { %s656_s18 = scalar_lea.hbm %s944_s12, 128  ;;  %s660_s25 = scalar_lea.hbm %s1001_s2, 256 }
 0x149   : > { %p657_p2 = scmp.ne.s32.totalorder %s944_s12, %s656_s18  ;;  %p661_p4 = scmp.lt.u32.totalorder %s944_s12, %s1001_s2 }
 0x14a   : > { %p662_p5 = scmp.lt.u32.totalorder %s660_s25, %s656_s18  ;;  %p664_p10 = scmp.lt.u32.totalorder %s656_s18, %s944_s12 }
 0x14b   : > { %p658_p6 = pnand %p657_p2, %p1024_p11 }
 0x14c   : > { %p663_p8 = por %p662_p5, %p661_p4 }
 0x14d   : > { %p659_p12 = pneg %p658_p6 }
 0x14e   : > { %p665_p1 = por %p664_p10, %p663_p8 }
 0x150   : > { %p666_p0 = pnand %p665_p1, %p659_p12 }
 0x152   : > { %669 = shalt.err (!%p666_p0)
}
 0x153   : > { %513 = dma.vmem_to_hbm [thread:$0]  (%p1024_p11), %s376_s10, 128, %s944_s12, %s359_s21   ;;  %v338_v20 = vld [vmem:[%s1002_s3] sm:$0xf]  ;;  %vm346_vm3 = vcmask 3072  }
 0x154   : > { %v348_v23 = vld [vmem:[%s1003_s4] sm:$0xf] }
 0x1cf   : > { %v344_v21 = vpop.xlane.xlu0 %343 }
 0x1d0   : > { %v345_v22 = vadd.f32 %v344_v21, %v338_v20 }
 0x1d2   : > { %347 = vst.msk [vmem:[%s1002_s3] sm:$0xf] %vm346_vm3, %v345_v22 }
 0x1d3   : > { %v355_v24 = vpop.xlane.xlu0 %354 }
 0x1d4   : > { %v356_v25 = vadd.f32 %v355_v24, %v348_v23 }
 0x1d6   : > { %357 = vst.msk [vmem:[%s1003_s4] sm:$0xf] %vm346_vm3, %v356_v25 }
 0x1d7 PF: > { %s399_s10 = sand.u32 1, %s708_s15   ;;  %p1025_p11 = scmp.ne.s32.totalorder %s1014_s28, 0 }
 0x1d8   : > { %p1026_p9 = scmp.ge.s32.totalorder %s728_s20, 2  ;;  %s400_s12 = scalar_lea.sflag [#allocation4], %s399_s10 }
 0x1da   : > { %p524_p3 = pnand %p1026_p9, %p1025_p11 }
 0x1dc   : > { %703 = dma.done.wait (!%p524_p3), %s400_s12, 128  }
 0x1dd   : > { %705 = vsyncadd (!%p524_p3), %s400_s12, 4294967168  ;;  %s22_s20 = sadd.s32 1, %s728_s20   ;;  %s1027_s15 = smov %s712_s16 }
 0x1de   : > { %p19_p7 = scmp.ge.s32.totalorder %s22_s20, 4   ;;  %s1028_s16 = smov %s716_s17 }
 0x1df   : > { %s1029_s17 = smov %s881_s5  ;;  %s1030_s18 = smov %s724_s19 }
 0x1e0   : > { %s1031_s19 = smov %s1033_s8  ;;  %21 = sbr.rel (!%p19_p7) target bundleno = 7 (0x7), region = 97 }
 0x1e7   :  { %405 = vsyncpa [#allocation3], 1 }
 0x1e8   :  { %407 = vsyncpa [#allocation3 + $0x1], 1 }
 0x1e9   :  { %408 = vsyncpa [#allocation6], 1 }
 0x1ea   :  { %409 = vsyncpa [#allocation4], 1 }
 0x1eb   :  { %411 = vsyncpa [#allocation4 + $0x1], 1 }

</bundles_post_ra>
